<compile_context>
chip_gen: v7x
topology: tpu7x:2x2x1
jax: 0.10.0
libtpu: 0.0.40
codegen_flags: <defaults>
</compile_context>

<pallas_src>
import functools

import jax
import jax.numpy as jnp
from jax.experimental import pallas as pl
from jax.experimental.pallas import tpu as pltpu


def _pick_batch_block(B, Lq, target_rows=512, prefer_multi_step=True):
    """Largest divisor of B with Bblk*Lq <= target_rows; keep >=2 grid steps if possible
    (v7x has 2 TensorCores and shards a 'parallel' grid axis across them)."""
    divisors = [d for d in range(1, B + 1) if B % d == 0]
    cand = [d for d in divisors if d * Lq <= target_rows] or [1]
    best = max(cand)
    if prefer_multi_step and best == B and B > 1:
        smaller = [d for d in cand if d < B]
        if smaller:
            best = max(smaller)
    return best


def _cross_attn_kernel(num_heads, head_dim, dim_q, Bblk, Lq, Lkv, compute_dtype,
                       q_ref, kv_ref,
                       wq_ref, bq_ref,
                       wkv_ref, bkv_ref,
                       wo_ref, bo_ref,
                       o_ref):
    H, hd = num_heads, head_dim

    q = q_ref[...]                                  # (Bblk*Lq,  dim_q)  compute_dtype
    kv = kv_ref[...]                                # (Bblk*Lkv, dim_kv) compute_dtype

    # Full-width projections (scale pre-folded into wq/bq), f32 accumulation.
    qp = jnp.dot(q, wq_ref[...],
                 preferred_element_type=jnp.float32) + bq_ref[...]       # (Bblk*Lq, dim_q)
    kvp = jnp.dot(kv, wkv_ref[...],
                  preferred_element_type=jnp.float32) + bkv_ref[...]     # (Bblk*Lkv, 2*dim_q)

    # One head-major relayout: stack heads along the leading (batch) axis.
    # Result batch index = h * Bblk + b.  (Sub-reshapes only touch leading/sublane dims.)
    qh = jnp.concatenate(
        [qp[:, h * hd:(h + 1) * hd].reshape(Bblk, Lq, hd) for h in range(H)],
        axis=0).astype(compute_dtype)                                    # (H*Bblk, Lq, hd)
    kh = jnp.concatenate(
        [kvp[:, h * hd:(h + 1) * hd].reshape(Bblk, Lkv, hd) for h in range(H)],
        axis=0).astype(compute_dtype)                                    # (H*Bblk, Lkv, hd)
    vh = jnp.concatenate(
        [kvp[:, dim_q + h * hd: dim_q + (h + 1) * hd].reshape(Bblk, Lkv, hd)
         for h in range(H)],
        axis=0).astype(compute_dtype)                                    # (H*Bblk, Lkv, hd)

    # One batched QK^T, one stacked softmax, one batched P@V.
    s = jnp.einsum('bqd,bkd->bqk', qh, kh,
                   preferred_element_type=jnp.float32)                   # (H*Bblk, Lq, Lkv)
    m = jnp.max(s, axis=-1, keepdims=True)
    e = jnp.exp(s - m)
    denom = jnp.sum(e, axis=-1, keepdims=True)
    r = pl.reciprocal(denom, approx=True)          # EUP slot
    r = r * (2.0 - denom * r)                      # one Newton step -> f32-level accuracy
    p = (e * r).astype(compute_dtype)

    o = jnp.einsum('bqk,bkd->bqd', p, vh,
                   preferred_element_type=jnp.float32)                   # (H*Bblk, Lq, hd)

    # Single relayout back to (Bblk*Lq, dim_q) (one lane-concat), then one full-width
    # output projection for all heads.
    attn = jnp.concatenate(
        [o[h * Bblk:(h + 1) * Bblk].reshape(Bblk * Lq, hd) for h in range(H)],
        axis=-1).astype(compute_dtype)                                   # (Bblk*Lq, dim_q)

    out = jnp.dot(attn, wo_ref[...],
                  preferred_element_type=jnp.float32) + bo_ref[...]      # (Bblk*Lq, dim_q)
    o_ref[...] = out.astype(o_ref.dtype)


def cross_attention_block(query, key_value, params, num_heads,
                          compute_dtype=jnp.float32, batch_block=None):
    """query: (B, Lq, dim_q)  key_value: (B, Lkv, dim_kv)  -> (B, Lq, dim_q)

    compute_dtype: dtype fed to the MXU (use jnp.bfloat16 on v5e/v6e/v7x for peak MXU
    throughput; all attention-matmul operands are cast so the MXU really runs bf16).
    Accumulation and softmax are always f32; the strict 1e-4 check below assumes f32.
    """
    B, Lq, dim_q = query.shape
    B2, Lkv, dim_kv = key_value.shape
    assert B == B2
    assert dim_q % num_heads == 0
    hd = dim_q // num_heads
    scale = 1.0 / (hd ** 0.5)

    Bblk = batch_block if batch_block is not None else _pick_batch_block(B, Lq)
    assert B % Bblk == 0
    grid_b = B // Bblk

    Wq, Wk, Wv = params["Wq"], params["Wk"], params["Wv"]
    bq, bk, bv = params["bq"], params["bk"], params["bv"]
    Wo, bo = params["Wo"], params["bo"]

    # Parameter prep (plain-JAX glue, done once):
    #  * fold 1/sqrt(hd) into the Q projection,
    #  * fuse K and V projections into one (dim_kv, 2*dim_q) weight,
    #  * pre-transpose so the kernel does plain row-major matmuls.
    wq_t = (scale * Wq).T.astype(compute_dtype)                           # (dim_q, dim_q)
    bq_s = (scale * bq).reshape(1, dim_q).astype(jnp.float32)
    wkv_t = jnp.concatenate([Wk.T, Wv.T], axis=1).astype(compute_dtype)   # (dim_kv, 2*dim_q)
    bkv_s = jnp.concatenate([bk, bv]).reshape(1, 2 * dim_q).astype(jnp.float32)
    wo_t = Wo.T.astype(compute_dtype)                                     # (dim_q, dim_q)
    bo_r = bo.reshape(1, dim_q).astype(jnp.float32)

    # Flat 2-D (rows, channels) slabs: free row-major reshapes in HBM, no in-kernel reshape
    # of the streamed blocks.
    q2 = query.reshape(B * Lq, dim_q).astype(compute_dtype)
    kv2 = key_value.reshape(B * Lkv, dim_kv).astype(compute_dtype)

    kernel = functools.partial(_cross_attn_kernel, num_heads, hd, dim_q,
                               Bblk, Lq, Lkv, compute_dtype)

    out2 = pl.pallas_call(
        kernel,
        out_shape=jax.ShapeDtypeStruct((B * Lq, dim_q), jnp.float32),
        grid_spec=pltpu.PrefetchScalarGridSpec(
            num_scalar_prefetch=0,
            grid=(grid_b,),
            in_specs=[
                pl.BlockSpec((Bblk * Lq, dim_q),    lambda b: (b, 0)),   # query rows
                pl.BlockSpec((Bblk * Lkv, dim_kv),  lambda b: (b, 0)),   # key_value rows
                pl.BlockSpec((dim_q, dim_q),        lambda b: (0, 0)),   # Wq^T   (resident)
                pl.BlockSpec((1, dim_q),            lambda b: (0, 0)),   # bq
                pl.BlockSpec((dim_kv, 2 * dim_q),   lambda b: (0, 0)),   # [Wk|Wv]^T (resident)
                pl.BlockSpec((1, 2 * dim_q),        lambda b: (0, 0)),   # [bk|bv]
                pl.BlockSpec((dim_q, dim_q),        lambda b: (0, 0)),   # Wo^T   (resident)
                pl.BlockSpec((1, dim_q),            lambda b: (0, 0)),   # bo
            ],
            out_specs=pl.BlockSpec((Bblk * Lq, dim_q), lambda b: (b, 0)),
        ),
        compiler_params=pltpu.CompilerParams(
            dimension_semantics=("parallel",),
            vmem_limit_bytes=32 * 1024 * 1024),
    )(q2, kv2, wq_t, bq_s, wkv_t, bkv_s, wo_t, bo_r)

    return out2.reshape(B, Lq, dim_q)


def cross_attention_reference(query, key_value, params, num_heads):
    """Pure-JAX reference matching torch.nn.MultiheadAttention semantics."""
    B, Lq, dim_q = query.shape
    _, Lkv, dim_kv = key_value.shape
    hd = dim_q // num_heads
    scale = 1.0 / (hd ** 0.5)

    qp = query @ params["Wq"].T + params["bq"]
    kp = key_value @ params["Wk"].T + params["bk"]
    vp = key_value @ params["Wv"].T + params["bv"]

    qh = qp.reshape(B, Lq, num_heads, hd).transpose(0, 2, 1, 3)
    kh = kp.reshape(B, Lkv, num_heads, hd).transpose(0, 2, 1, 3)
    vh = vp.reshape(B, Lkv, num_heads, hd).transpose(0, 2, 1, 3)

    s = jnp.einsum("bhqd,bhkd->bhqk", qh * scale, kh)
    p = jax.nn.softmax(s, axis=-1)
    o = jnp.einsum("bhqk,bhkd->bhqd", p, vh)
    o = o.transpose(0, 2, 1, 3).reshape(B, Lq, dim_q)
    return o @ params["Wo"].T + params["bo"]


if __name__ == "__main__":
    B, Lq, Lkv = 2, 8, 16
    dim_q, dim_kv, num_heads = 32, 16, 8

    key = jax.random.PRNGKey(0)
    ks = jax.random.split(key, 10)

    query = jax.random.normal(ks[0], (B, Lq, dim_q), jnp.float32)
    key_value = jax.random.normal(ks[1], (B, Lkv, dim_kv), jnp.float32)

    # Deterministic synthetic parameters (PyTorch MultiheadAttention shapes).
    params = {
        "Wq": jax.random.normal(ks[2], (dim_q, dim_q), jnp.float32) / jnp.sqrt(dim_q),
        "Wk": jax.random.normal(ks[3], (dim_q, dim_kv), jnp.float32) / jnp.sqrt(dim_kv),
        "Wv": jax.random.normal(ks[4], (dim_q, dim_kv), jnp.float32) / jnp.sqrt(dim_kv),
        "bq": 0.1 * jax.random.normal(ks[5], (dim_q,), jnp.float32),
        "bk": 0.1 * jax.random.normal(ks[6], (dim_q,), jnp.float32),
        "bv": 0.1 * jax.random.normal(ks[7], (dim_q,), jnp.float32),
        "Wo": jax.random.normal(ks[8], (dim_q, dim_q), jnp.float32) / jnp.sqrt(dim_q),
        "bo": 0.1 * jax.random.normal(ks[9], (dim_q,), jnp.float32),
    }

    out = cross_attention_block(query, key_value, params, num_heads)
    out = jax.block_until_ready(out)

    ref = cross_attention_reference(query, key_value, params, num_heads)
    assert out.shape == (B, Lq, dim_q)
    assert jnp.allclose(out, ref, atol=1e-4, rtol=1e-4), float(jnp.max(jnp.abs(out - ref)))

    print("KERNEL_OK")
</pallas_src>

<mosaic_0001>
module attributes {stable_mosaic.version = 11 : i64} {
  func.func @_cross_attn_kernel(%arg0: i32, %arg1: memref<8x32xf32, #tpu.memory_space<vmem>>, %arg2: memref<16x16xf32, #tpu.memory_space<vmem>>, %arg3: memref<32x32xf32, #tpu.memory_space<vmem>>, %arg4: memref<1x32xf32, #tpu.memory_space<vmem>>, %arg5: memref<16x64xf32, #tpu.memory_space<vmem>>, %arg6: memref<1x64xf32, #tpu.memory_space<vmem>>, %arg7: memref<32x32xf32, #tpu.memory_space<vmem>>, %arg8: memref<1x32xf32, #tpu.memory_space<vmem>>, %arg9: memref<8x32xf32, #tpu.memory_space<vmem>>) attributes {dimension_semantics = [#tpu.dimension_semantics<parallel>], iteration_bounds = array<i64: 2>, scalar_prefetch = 0 : i64, scratch_operands = 0 : i64, tpu.core_type = #tpu.core_type<tc>, window_params = [{transform_indices = @transform_0, window_bounds = array<i64: 8, 32>}, {transform_indices = @transform_1, window_bounds = array<i64: 16, 16>}, {pipeline_mode = #tpu.pipeline_mode<synchronous>, transform_indices = @transform_2, window_bounds = array<i64: 32, 32>}, {pipeline_mode = #tpu.pipeline_mode<synchronous>, transform_indices = @transform_3, window_bounds = array<i64: 1, 32>}, {pipeline_mode = #tpu.pipeline_mode<synchronous>, transform_indices = @transform_4, window_bounds = array<i64: 16, 64>}, {pipeline_mode = #tpu.pipeline_mode<synchronous>, transform_indices = @transform_5, window_bounds = array<i64: 1, 64>}, {pipeline_mode = #tpu.pipeline_mode<synchronous>, transform_indices = @transform_6, window_bounds = array<i64: 32, 32>}, {pipeline_mode = #tpu.pipeline_mode<synchronous>, transform_indices = @transform_7, window_bounds = array<i64: 1, 32>}, {transform_indices = @transform_8, window_bounds = array<i64: 8, 32>}]} {
    %c0 = arith.constant 0 : index
    %c0_0 = arith.constant 0 : index
    %0 = vector.load %arg1[%c0, %c0_0] : memref<8x32xf32, #tpu.memory_space<vmem>>, vector<8x32xf32>
    %c0_1 = arith.constant 0 : index
    %c0_2 = arith.constant 0 : index
    %1 = vector.load %arg2[%c0_1, %c0_2] : memref<16x16xf32, #tpu.memory_space<vmem>>, vector<16x16xf32>
    %c0_3 = arith.constant 0 : index
    %c0_4 = arith.constant 0 : index
    %2 = vector.load %arg3[%c0_3, %c0_4] : memref<32x32xf32, #tpu.memory_space<vmem>>, vector<32x32xf32>
    %cst = arith.constant dense<0.000000e+00> : vector<8x32xf32>
    %3 = tpu.matmul %0, %2, %cst {dimension_numbers = #tpu.dot_dimension_numbers<[1], [0], [0], [1], [0, 0, 1, 1], [], []>} : vector<8x32xf32>, vector<32x32xf32>, vector<8x32xf32> -> vector<8x32xf32>
    %c0_5 = arith.constant 0 : index
    %c0_6 = arith.constant 0 : index
    %4 = vector.load %arg4[%c0_5, %c0_6] : memref<1x32xf32, #tpu.memory_space<vmem>>, vector<1x32xf32>
    %5 = vector.broadcast %4 : vector<1x32xf32> to vector<8x32xf32>
    %6 = arith.addf %3, %5 : vector<8x32xf32>
    %c0_7 = arith.constant 0 : index
    %c0_8 = arith.constant 0 : index
    %7 = vector.load %arg5[%c0_7, %c0_8] : memref<16x64xf32, #tpu.memory_space<vmem>>, vector<16x64xf32>
    %cst_9 = arith.constant dense<0.000000e+00> : vector<16x64xf32>
    %8 = tpu.matmul %1, %7, %cst_9 {dimension_numbers = #tpu.dot_dimension_numbers<[1], [0], [0], [1], [0, 0, 1, 1], [], []>} : vector<16x16xf32>, vector<16x64xf32>, vector<16x64xf32> -> vector<16x64xf32>
    %c0_10 = arith.constant 0 : index
    %c0_11 = arith.constant 0 : index
    %9 = vector.load %arg6[%c0_10, %c0_11] : memref<1x64xf32, #tpu.memory_space<vmem>>, vector<1x64xf32>
    %10 = vector.broadcast %9 : vector<1x64xf32> to vector<16x64xf32>
    %11 = arith.addf %8, %10 : vector<16x64xf32>
    %12 = vector.extract_strided_slice %6 {offsets = [0, 0], sizes = [8, 4], strides = [1, 1]} : vector<8x32xf32> to vector<8x4xf32>
    %13 = vector.shape_cast %12 : vector<8x4xf32> to vector<1x8x4xf32>
    %14 = vector.extract_strided_slice %6 {offsets = [0, 4], sizes = [8, 4], strides = [1, 1]} : vector<8x32xf32> to vector<8x4xf32>
    %15 = vector.shape_cast %14 : vector<8x4xf32> to vector<1x8x4xf32>
    %16 = vector.extract_strided_slice %6 {offsets = [0, 8], sizes = [8, 4], strides = [1, 1]} : vector<8x32xf32> to vector<8x4xf32>
    %17 = vector.shape_cast %16 : vector<8x4xf32> to vector<1x8x4xf32>
    %18 = vector.extract_strided_slice %6 {offsets = [0, 12], sizes = [8, 4], strides = [1, 1]} : vector<8x32xf32> to vector<8x4xf32>
    %19 = vector.shape_cast %18 : vector<8x4xf32> to vector<1x8x4xf32>
    %20 = vector.extract_strided_slice %6 {offsets = [0, 16], sizes = [8, 4], strides = [1, 1]} : vector<8x32xf32> to vector<8x4xf32>
    %21 = vector.shape_cast %20 : vector<8x4xf32> to vector<1x8x4xf32>
    %22 = vector.extract_strided_slice %6 {offsets = [0, 20], sizes = [8, 4], strides = [1, 1]} : vector<8x32xf32> to vector<8x4xf32>
    %23 = vector.shape_cast %22 : vector<8x4xf32> to vector<1x8x4xf32>
    %24 = vector.extract_strided_slice %6 {offsets = [0, 24], sizes = [8, 4], strides = [1, 1]} : vector<8x32xf32> to vector<8x4xf32>
    %25 = vector.shape_cast %24 : vector<8x4xf32> to vector<1x8x4xf32>
    %26 = vector.extract_strided_slice %6 {offsets = [0, 28], sizes = [8, 4], strides = [1, 1]} : vector<8x32xf32> to vector<8x4xf32>
    %27 = vector.shape_cast %26 : vector<8x4xf32> to vector<1x8x4xf32>
    %28 = tpu.concatenate %13, %15, %17, %19, %21, %23, %25, %27 in 0 : vector<1x8x4xf32>, vector<1x8x4xf32>, vector<1x8x4xf32>, vector<1x8x4xf32>, vector<1x8x4xf32>, vector<1x8x4xf32>, vector<1x8x4xf32>, vector<1x8x4xf32> -> vector<8x8x4xf32>
    %29 = vector.extract_strided_slice %11 {offsets = [0, 0], sizes = [16, 4], strides = [1, 1]} : vector<16x64xf32> to vector<16x4xf32>
    %30 = vector.shape_cast %29 : vector<16x4xf32> to vector<1x16x4xf32>
    %31 = vector.extract_strided_slice %11 {offsets = [0, 4], sizes = [16, 4], strides = [1, 1]} : vector<16x64xf32> to vector<16x4xf32>
    %32 = vector.shape_cast %31 : vector<16x4xf32> to vector<1x16x4xf32>
    %33 = vector.extract_strided_slice %11 {offsets = [0, 8], sizes = [16, 4], strides = [1, 1]} : vector<16x64xf32> to vector<16x4xf32>
    %34 = vector.shape_cast %33 : vector<16x4xf32> to vector<1x16x4xf32>
    %35 = vector.extract_strided_slice %11 {offsets = [0, 12], sizes = [16, 4], strides = [1, 1]} : vector<16x64xf32> to vector<16x4xf32>
    %36 = vector.shape_cast %35 : vector<16x4xf32> to vector<1x16x4xf32>
    %37 = vector.extract_strided_slice %11 {offsets = [0, 16], sizes = [16, 4], strides = [1, 1]} : vector<16x64xf32> to vector<16x4xf32>
    %38 = vector.shape_cast %37 : vector<16x4xf32> to vector<1x16x4xf32>
    %39 = vector.extract_strided_slice %11 {offsets = [0, 20], sizes = [16, 4], strides = [1, 1]} : vector<16x64xf32> to vector<16x4xf32>
    %40 = vector.shape_cast %39 : vector<16x4xf32> to vector<1x16x4xf32>
    %41 = vector.extract_strided_slice %11 {offsets = [0, 24], sizes = [16, 4], strides = [1, 1]} : vector<16x64xf32> to vector<16x4xf32>
    %42 = vector.shape_cast %41 : vector<16x4xf32> to vector<1x16x4xf32>
    %43 = vector.extract_strided_slice %11 {offsets = [0, 28], sizes = [16, 4], strides = [1, 1]} : vector<16x64xf32> to vector<16x4xf32>
    %44 = vector.shape_cast %43 : vector<16x4xf32> to vector<1x16x4xf32>
    %45 = tpu.concatenate %30, %32, %34, %36, %38, %40, %42, %44 in 0 : vector<1x16x4xf32>, vector<1x16x4xf32>, vector<1x16x4xf32>, vector<1x16x4xf32>, vector<1x16x4xf32>, vector<1x16x4xf32>, vector<1x16x4xf32>, vector<1x16x4xf32> -> vector<8x16x4xf32>
    %46 = vector.extract_strided_slice %11 {offsets = [0, 32], sizes = [16, 4], strides = [1, 1]} : vector<16x64xf32> to vector<16x4xf32>
    %47 = vector.shape_cast %46 : vector<16x4xf32> to vector<1x16x4xf32>
    %48 = vector.extract_strided_slice %11 {offsets = [0, 36], sizes = [16, 4], strides = [1, 1]} : vector<16x64xf32> to vector<16x4xf32>
    %49 = vector.shape_cast %48 : vector<16x4xf32> to vector<1x16x4xf32>
    %50 = vector.extract_strided_slice %11 {offsets = [0, 40], sizes = [16, 4], strides = [1, 1]} : vector<16x64xf32> to vector<16x4xf32>
    %51 = vector.shape_cast %50 : vector<16x4xf32> to vector<1x16x4xf32>
    %52 = vector.extract_strided_slice %11 {offsets = [0, 44], sizes = [16, 4], strides = [1, 1]} : vector<16x64xf32> to vector<16x4xf32>
    %53 = vector.shape_cast %52 : vector<16x4xf32> to vector<1x16x4xf32>
    %54 = vector.extract_strided_slice %11 {offsets = [0, 48], sizes = [16, 4], strides = [1, 1]} : vector<16x64xf32> to vector<16x4xf32>
    %55 = vector.shape_cast %54 : vector<16x4xf32> to vector<1x16x4xf32>
    %56 = vector.extract_strided_slice %11 {offsets = [0, 52], sizes = [16, 4], strides = [1, 1]} : vector<16x64xf32> to vector<16x4xf32>
    %57 = vector.shape_cast %56 : vector<16x4xf32> to vector<1x16x4xf32>
    %58 = vector.extract_strided_slice %11 {offsets = [0, 56], sizes = [16, 4], strides = [1, 1]} : vector<16x64xf32> to vector<16x4xf32>
    %59 = vector.shape_cast %58 : vector<16x4xf32> to vector<1x16x4xf32>
    %60 = vector.extract_strided_slice %11 {offsets = [0, 60], sizes = [16, 4], strides = [1, 1]} : vector<16x64xf32> to vector<16x4xf32>
    %61 = vector.shape_cast %60 : vector<16x4xf32> to vector<1x16x4xf32>
    %62 = tpu.concatenate %47, %49, %51, %53, %55, %57, %59, %61 in 0 : vector<1x16x4xf32>, vector<1x16x4xf32>, vector<1x16x4xf32>, vector<1x16x4xf32>, vector<1x16x4xf32>, vector<1x16x4xf32>, vector<1x16x4xf32>, vector<1x16x4xf32> -> vector<8x16x4xf32>
    "tpu.trace_start"() <{level = 10 : i32, message = "bqd,bkd->bqk"}> : () -> ()
    %cst_12 = arith.constant dense<0.000000e+00> : vector<8x8x16xf32>
    %63 = tpu.matmul %28, %45, %cst_12 {dimension_numbers = #tpu.dot_dimension_numbers<[2], [2], [1], [1], [0, 0, 0, 1, 1, 1], [0], [0]>} : vector<8x8x4xf32>, vector<8x16x4xf32>, vector<8x8x16xf32> -> vector<8x8x16xf32>
    "tpu.trace_stop"() : () -> ()
    %cst_13 = arith.constant dense<0xFF800000> : vector<8x8xf32>
    %64 = vector.multi_reduction <maximumf>, %63, %cst_13 [2] : vector<8x8x16xf32> to vector<8x8xf32>
    %65 = vector.shape_cast %64 : vector<8x8xf32> to vector<8x8x1xf32>
    %66 = vector.broadcast %65 : vector<8x8x1xf32> to vector<8x8x16xf32>
    %67 = arith.subf %63, %66 : vector<8x8x16xf32>
    %68 = math.exp %67 : vector<8x8x16xf32>
    %cst_14 = arith.constant dense<0.000000e+00> : vector<8x8xf32>
    %69 = vector.multi_reduction <add>, %68, %cst_14 [2] : vector<8x8x16xf32> to vector<8x8xf32>
    %70 = vector.shape_cast %69 : vector<8x8xf32> to vector<8x8x1xf32>
    %71 = tpu.reciprocal %70 {approx = true} : vector<8x8x1xf32> -> vector<8x8x1xf32>
    %72 = arith.mulf %70, %71 : vector<8x8x1xf32>
    %cst_15 = arith.constant 2.000000e+00 : f32
    %73 = vector.broadcast %cst_15 : f32 to vector<8x8x1xf32>
    %74 = arith.subf %73, %72 : vector<8x8x1xf32>
    %75 = arith.mulf %71, %74 : vector<8x8x1xf32>
    %76 = vector.broadcast %75 : vector<8x8x1xf32> to vector<8x8x16xf32>
    %77 = arith.mulf %68, %76 : vector<8x8x16xf32>
    "tpu.trace_start"() <{level = 10 : i32, message = "bqk,bkd->bqd"}> : () -> ()
    %cst_16 = arith.constant dense<0.000000e+00> : vector<8x8x4xf32>
    %78 = tpu.matmul %77, %62, %cst_16 {dimension_numbers = #tpu.dot_dimension_numbers<[2], [1], [1], [2], [0, 0, 0, 1, 1, 2], [0], [0]>} : vector<8x8x16xf32>, vector<8x16x4xf32>, vector<8x8x4xf32> -> vector<8x8x4xf32>
    "tpu.trace_stop"() : () -> ()
    %79 = vector.extract_strided_slice %78 {offsets = [0, 0, 0], sizes = [1, 8, 4], strides = [1, 1, 1]} : vector<8x8x4xf32> to vector<1x8x4xf32>
    %80 = vector.shape_cast %79 : vector<1x8x4xf32> to vector<8x4xf32>
    %81 = vector.extract_strided_slice %78 {offsets = [1, 0, 0], sizes = [1, 8, 4], strides = [1, 1, 1]} : vector<8x8x4xf32> to vector<1x8x4xf32>
    %82 = vector.shape_cast %81 : vector<1x8x4xf32> to vector<8x4xf32>
    %83 = vector.extract_strided_slice %78 {offsets = [2, 0, 0], sizes = [1, 8, 4], strides = [1, 1, 1]} : vector<8x8x4xf32> to vector<1x8x4xf32>
    %84 = vector.shape_cast %83 : vector<1x8x4xf32> to vector<8x4xf32>
    %85 = vector.extract_strided_slice %78 {offsets = [3, 0, 0], sizes = [1, 8, 4], strides = [1, 1, 1]} : vector<8x8x4xf32> to vector<1x8x4xf32>
    %86 = vector.shape_cast %85 : vector<1x8x4xf32> to vector<8x4xf32>
    %87 = vector.extract_strided_slice %78 {offsets = [4, 0, 0], sizes = [1, 8, 4], strides = [1, 1, 1]} : vector<8x8x4xf32> to vector<1x8x4xf32>
    %88 = vector.shape_cast %87 : vector<1x8x4xf32> to vector<8x4xf32>
    %89 = vector.extract_strided_slice %78 {offsets = [5, 0, 0], sizes = [1, 8, 4], strides = [1, 1, 1]} : vector<8x8x4xf32> to vector<1x8x4xf32>
    %90 = vector.shape_cast %89 : vector<1x8x4xf32> to vector<8x4xf32>
    %91 = vector.extract_strided_slice %78 {offsets = [6, 0, 0], sizes = [1, 8, 4], strides = [1, 1, 1]} : vector<8x8x4xf32> to vector<1x8x4xf32>
    %92 = vector.shape_cast %91 : vector<1x8x4xf32> to vector<8x4xf32>
    %93 = vector.extract_strided_slice %78 {offsets = [7, 0, 0], sizes = [1, 8, 4], strides = [1, 1, 1]} : vector<8x8x4xf32> to vector<1x8x4xf32>
    %94 = vector.shape_cast %93 : vector<1x8x4xf32> to vector<8x4xf32>
    %95 = tpu.concatenate %80, %82, %84, %86, %88, %90, %92, %94 in 1 : vector<8x4xf32>, vector<8x4xf32>, vector<8x4xf32>, vector<8x4xf32>, vector<8x4xf32>, vector<8x4xf32>, vector<8x4xf32>, vector<8x4xf32> -> vector<8x32xf32>
    %c0_17 = arith.constant 0 : index
    %c0_18 = arith.constant 0 : index
    %96 = vector.load %arg7[%c0_17, %c0_18] : memref<32x32xf32, #tpu.memory_space<vmem>>, vector<32x32xf32>
    %cst_19 = arith.constant dense<0.000000e+00> : vector<8x32xf32>
    %97 = tpu.matmul %95, %96, %cst_19 {dimension_numbers = #tpu.dot_dimension_numbers<[1], [0], [0], [1], [0, 0, 1, 1], [], []>} : vector<8x32xf32>, vector<32x32xf32>, vector<8x32xf32> -> vector<8x32xf32>
    %c0_20 = arith.constant 0 : index
    %c0_21 = arith.constant 0 : index
    %98 = vector.load %arg8[%c0_20, %c0_21] : memref<1x32xf32, #tpu.memory_space<vmem>>, vector<1x32xf32>
    %99 = vector.broadcast %98 : vector<1x32xf32> to vector<8x32xf32>
    %100 = arith.addf %97, %99 : vector<8x32xf32>
    %c0_22 = arith.constant 0 : index
    %c0_23 = arith.constant 0 : index
    %101 = vector.load %arg9[%c0_22, %c0_23] : memref<8x32xf32, #tpu.memory_space<vmem>>, vector<8x32xf32>
    tpu.vector_store %arg9[%c0_22, %c0_23], %100 {strides = array<i32>} : memref<8x32xf32, #tpu.memory_space<vmem>>, vector<8x32xf32>,
    return
  }
  func.func @transform_0(%arg0: i32) -> (i32, i32) {
    %c0_i32 = arith.constant 0 : i32
    %c0_i32_0 = arith.constant 0 : i32
    return %arg0, %c0_i32 : i32, i32
  }
  func.func @transform_1(%arg0: i32) -> (i32, i32) {
    %c0_i32 = arith.constant 0 : i32
    %c0_i32_0 = arith.constant 0 : i32
    return %arg0, %c0_i32 : i32, i32
  }
  func.func @transform_2(%arg0: i32) -> (i32, i32) {
    %c0_i32 = arith.constant 0 : i32
    %c0_i32_0 = arith.constant 0 : i32
    %c0_i32_1 = arith.constant 0 : i32
    return %c0_i32, %c0_i32_0 : i32, i32
  }
  func.func @transform_3(%arg0: i32) -> (i32, i32) {
    %c0_i32 = arith.constant 0 : i32
    %c0_i32_0 = arith.constant 0 : i32
    %c0_i32_1 = arith.constant 0 : i32
    return %c0_i32, %c0_i32_0 : i32, i32
  }
  func.func @transform_4(%arg0: i32) -> (i32, i32) {
    %c0_i32 = arith.constant 0 : i32
    %c0_i32_0 = arith.constant 0 : i32
    %c0_i32_1 = arith.constant 0 : i32
    return %c0_i32, %c0_i32_0 : i32, i32
  }
  func.func @transform_5(%arg0: i32) -> (i32, i32) {
    %c0_i32 = arith.constant 0 : i32
    %c0_i32_0 = arith.constant 0 : i32
    %c0_i32_1 = arith.constant 0 : i32
    return %c0_i32, %c0_i32_0 : i32, i32
  }
  func.func @transform_6(%arg0: i32) -> (i32, i32) {
    %c0_i32 = arith.constant 0 : i32
    %c0_i32_0 = arith.constant 0 : i32
    %c0_i32_1 = arith.constant 0 : i32
    return %c0_i32, %c0_i32_0 : i32, i32
  }
  func.func @transform_7(%arg0: i32) -> (i32, i32) {
    %c0_i32 = arith.constant 0 : i32
    %c0_i32_0 = arith.constant 0 : i32
    %c0_i32_1 = arith.constant 0 : i32
    return %c0_i32, %c0_i32_0 : i32, i32
  }
  func.func @transform_8(%arg0: i32) -> (i32, i32) {
    %c0_i32 = arith.constant 0 : i32
    %c0_i32_0 = arith.constant 0 : i32
    return %arg0, %c0_i32 : i32, i32
  }
}

</mosaic_0001>

<bundles_post_ra>
// kernel: tpu_custom_call.1
= control target key start
LH: loop header
LB: loop body
LE: loop exit
PB: predicated region body
PF: predicated region fallthrough
CT: control target
= control target key end

     0   :  { %13 = vsyncpa [#allocation3], 0  ;;  %s3324_s0 = inlined_call_operand.hbm [shape: f32[16,32], index: 0, kind: input, shape index: {}]   ;;  %s3325_s1 = inlined_call_operand.vmem [shape: f32[32,16], index: 1, kind: input, shape index: {}]   ;;  %s3326_s2 = inlined_call_operand.vmem [shape: f32[32,32], index: 2, kind: input, shape index: {}]   ;;  %s3327_s3 = inlined_call_operand.vmem [shape: f32[1,32], index: 3, kind: input, shape index: {}]   ;;  %s3328_s4 = inlined_call_operand.hbm [shape: f32[16,64], index: 4, kind: input, shape index: {}]   ;;  %s3329_s5 = inlined_call_operand.vmem [shape: f32[1,64], index: 5, kind: input, shape index: {}]   ;;  %s3330_s6 = inlined_call_operand.vmem [shape: f32[32,32], index: 6, kind: input, shape index: {}]   ;;  %s3331_s7 = inlined_call_operand.vmem [shape: f32[1,32], index: 7, kind: input, shape index: {}]   ;;  %s3332_s8 = inlined_call_operand.hbm [shape: f32[16,32], index: 8, kind: output, shape index: {}]  }
   0x1   :  { %15 = vsyncpa [#allocation3 + $0x1], 0 }
   0x2   :  { %16 = vsyncpa [#allocation6], 0 }
   0x3   :  { %17 = vsyncpa [#allocation4], 0 }
   0x4   :  { %19 = vsyncpa [#allocation4 + $0x1], 0  ;;  %s2878_s27 = smov 0   ;;  %s2880_s28 = smov 0  }
   0x5   :  { %s2882_s29 = smov 0   ;;  %s2884_s30 = smov 0  }
   0x6 LB: > { %s2899_s9 = sadd.s32 4294967295, %s2808_s30   ;;  %s2166_s10 = sadd.s32 4294967294, %s2808_s30   ;;  %s2808_s30 = sphi %s2884_s30, %s3354_s30   ;;  %s2804_s29 = sphi %s2882_s29, %s3357_s29   ;;  %s2800_s28 = sphi %s2880_s28, %s3356_s28   ;;  %s2796_s27 = sphi %s2878_s27, %s3355_s27  }
   0x7   : > { %p45_p0 = scmp.ne.s32.totalorder %s2800_s28, %s2796_s27  ;;  %p3333_p1 = scmp.eq.s32.totalorder %s2899_s9, 0 }
   0x8   : > { %p227_p3 = scmp.eq.s32.totalorder %s2166_s10, 1  ;;  %p2167_p5 = scmp.ge.s32.totalorder %s2808_s30, 1 }
   0x9   : > { %p2908_p4 = por %p3333_p1, %p45_p0  ;;  %p234_p7 = scmp.lt.s32.totalorder %s2808_s30, 3 }
   0xa   : > { %p2913_p6 = por %p227_p3, %p45_p0  ;;  %s2810_s14 = smov [#allocation5]  }
   0xb   : > { %s3338_s11 = scalar_select %p2908_p4, 1, 0 }
   0xc   : > { %s3339_s12 = scalar_select %p2913_p6, 1, 0 }
   0xd   : > { %p2918_p8 = pnand %p2167_p5, %p234_p7  ;;  %s252_s15 = sshll.u32 %s2810_s14, 4  ;;  %s2922_s15 = int_to_ptr.vmem [resolvable:$true] %s252_s15 }
   0xe   : > { %s2934_s17 = sadd.s32 1, %s2808_s30   ;;  %s32_s18 = sadd.s32 1, %s2804_s29 }
   0xf   : > { %s3340_s13 = scalar_select %p2918_p8, 1, 0 }
  0x10   : > { %p2504_p9 = pneg %p2918_p8  ;;  %3342 = sst [smem:[#allocation11_spill]] %s2934_s17 }
  0x11   : > { %s29_s19 = ssub.s32 %s2808_s30, %s2934_s17  ;;  %s2680_s22 = scalar_lea.hbm %s3328_s4, 256 }
  0x12   : > { %p2929_p11 = pnand %p2504_p9, %p3333_p1  ;;  %p2681_p12 = scmp.ne.s32.totalorder %s3328_s4, %s2680_s22 }
  0x13   : > { %p2687_p5 = scmp.lt.u32.totalorder %s2680_s22, %s3328_s4 }
  0x14   : > { %p2682_p13 = pneg %p2929_p11 }
  0x16   : > { %p2683_p0 = pnand %p2682_p13, %p2681_p12 }
  0x18   : > { %p2684_p3 = pneg %p2683_p0 }
  0x1a   : > { %p2689_p7 = pnand %p2687_p5, %p2684_p3 }
  0x1c   : > { %2692 = shalt.err (!%p2689_p7)
}
  0x1d   : > { %s2693_s10 = scalar_lea.vmem %s2922_s15, 256  ;;  %p2701_p2 = scmp.lt.s32.totalorder %s2922_s15, %s2922_s15 }
  0x1e   : > { %p2694_p9 = scmp.ne.s32.totalorder %s2922_s15, %s2693_s10  ;;  %p2702_p6 = scmp.lt.s32.totalorder %s2693_s10, %s2693_s10 }
  0x20   : > { %p2696_p10 = pnand %p2694_p9, %p2682_p13  ;;  %p2703_p4 = por %p2702_p6, %p2701_p2 }
  0x22   : > { %p2697_p1 = pneg %p2696_p10 }
  0x24   : > { %p2704_p8 = pnand %p2703_p4, %p2697_p1 }
  0x26   : > { %2707 = shalt.err (!%p2704_p8)
}
  0x27   : > { %s2811_s14 = smov 128   ;;  %s2812_s20 = smov 8  }
  0x28   : > { %2507 = dma.hbm_to_vmem [thread:$0]  (!%p2929_p11), %s3328_s4, 256, %s2922_s15, [#allocation6], %s2811_s14, %s2811_s14, %s2812_s20  }
  0x29   : > { %p30_p2 = scmp.eq.s32.totalorder %s29_s19, 0  ;;  %p39_p1 = scmp.ne.s32.totalorder %s2804_s29, %s2800_s28 }
  0x2a   : > { %p40_p4 = scmp.eq.s32.totalorder %s2808_s30, 0  ;;  %p2517_p6 = scmp.lt.s32.totalorder %s2808_s30, 2 }
  0x2b   : > { %s2965_s23 = scalar_select %p30_p2, %s2804_s29, %s32_s18  }
  0x2c   : > { %p41_p8 = por %p40_p4, %p39_p1  ;;  %p3343_p10 = scmp.eq.s32.totalorder %s2899_s9, 1 }
  0x2d   : > { %s275_s25 = sand.u32 1, %s2804_s29   ;;  %s2171_s26 = sshll.u32 %s2808_s30, 7 }
  0x2e   : > { %p2969_p12 = por %p3343_p10, %p39_p1  ;;  %s2170_s10 = sshll.u32 %s275_s25, 3 }
  0x2f   : > { %s2978_s21 = scalar_lea.hbm %s3324_s0, %s2171_s26  ;;  %s279_s15 = scalar_lea.vmem [#allocation2], %s2170_s10 }
  0x30   : > { %s286_s18 = sshll.u32 %s279_s15, 4  ;;  %p2980_p11 = pnand %p2517_p6, %p41_p8  ;;  %s2984_s18 = int_to_ptr.vmem [resolvable:$true] %s286_s18 }
  0x31   : > { %s276_s14 = scalar_lea.sflag [#allocation3], %s275_s25  ;;  %s2708_s20 = scalar_lea.hbm %s2978_s21, 128 }
  0x32   : > { %p2709_p13 = scmp.ne.s32.totalorder %s2978_s21, %s2708_s20  ;;  %p2710_p0 = pneg %p2980_p11 }
  0x33   : > { %s2713_s26 = scalar_lea.hbm %s3324_s0, 256  ;;  %p2714_p7 = scmp.lt.u32.totalorder %s2978_s21, %s3324_s0 }
  0x34   : > { %p2711_p3 = pnand %p2710_p0, %p2709_p13  ;;  %p2715_p9 = scmp.lt.u32.totalorder %s2713_s26, %s2708_s20 }
  0x35   : > { %p2717_p1 = scmp.lt.u32.totalorder %s2708_s20, %s2978_s21 }
  0x36   : > { %p2712_p5 = pneg %p2711_p3  ;;  %p2716_p2 = por %p2715_p9, %p2714_p7 }
  0x38   : > { %p2718_p4 = por %p2717_p1, %p2716_p2 }
  0x3a   : > { %p2719_p6 = pnand %p2718_p4, %p2712_p5 }
  0x3c   : > { %2722 = shalt.err (!%p2719_p6)
}
  0x3d   : > { %s2723_s25 = scalar_lea.vmem %s2984_s18, 128  ;;  %s2813_s15 = smov [#allocation2]  }
  0x3e   : > { %p2724_p8 = scmp.ne.s32.totalorder %s2984_s18, %s2723_s25  ;;  %s2728_s17 = sshll.u32 %s2813_s15, 4  ;;  %s2729_s17 = int_to_ptr.vmem [resolvable:$false] %s2728_s17 }
  0x3f   : > { %s2730_s22 = scalar_lea.vmem %s2729_s17, 256  ;;  %p2731_p3 = scmp.lt.s32.totalorder %s2984_s18, %s2729_s17 }
  0x40   : > { %p2726_p10 = pnand %p2724_p8, %p2710_p0  ;;  %p2732_p7 = scmp.lt.s32.totalorder %s2730_s22, %s2723_s25 }
  0x42   : > { %p2727_p13 = pneg %p2726_p10  ;;  %p2733_p9 = por %p2732_p7, %p2731_p3 }
  0x44   : > { %p2734_p2 = pnand %p2733_p9, %p2727_p13 }
  0x46   : > { %2737 = shalt.err (!%p2734_p2)
}
  0x47   : > { %2511 = dma.hbm_to_vmem [thread:$0]  (!%p2980_p11), %s2978_s21, 128, %s2984_s18, %s276_s14  }
  0x48   : > { %p3346_p5 = scmp.ne.s32.totalorder %s3340_s13, 0 }
  0x49   : > { %s3014_s20 = sand.u32 (!%p3346_p5), 1, %s2800_s28   ;;  %p3347_p0 = scmp.ne.s32.totalorder (!%p3346_p5), %s3338_s11, 0 }
  0x4a   : > { %304 = sbr.rel (%p3346_p5) target bundleno = 1548 (0x60c), region = 52  ;;  %s2173_s26 = sshll.u32 (!%p3346_p5), %s3014_s20, 3 }
  0x4b   : > { %s307_s10 = scalar_lea.sflag (!%p3346_p5), [#allocation3], %s3014_s20  ;;  %s3020_s16 = scalar_lea.vmem (!%p3346_p5), [#allocation2], %s2173_s26 }
  0x51   : > { %2783 = dma.done.wait (%p3347_p0), %s307_s10, 128  }
  0x52   : > { %2785 = vsyncadd (%p3347_p0), %s307_s10, 4294967168  ;;  %p3348_p11 = scmp.eq.s32.totalorder %s2899_s9, 0 }
  0x54   : > { %2787 = dma.done.wait (%p3348_p11), [#allocation6], 256   ;;  %p3349_p1 = pmov %p3348_p11 }
  0x55   : > { %s2176_s13 = sshll.u32 %s2899_s9, 1  ;;  %v2814_v0 = vmov 0.0|0.0   ;;  %vm2815_vm0 = vmmov 0   ;;  %v2816_v1 = vmov 0.0   ;;  %vm455_vm1 = vcmask 130048   ;;  %v446_v2 = vld [vmem:[#allocation5] sm:$0xff] }
  0x56   : > { %2789 = vsyncadd (%p3349_p1), [#allocation6], 4294967040  ;;  %2424 = vmatprep.subr.bf16.mxu0 %v2814_v0  ;;  %p353_p4 = scmp.lt.s32.totalorder %s2176_s13, 3  ;;  %2291 = vmatprep.mubr.msk.f32.mxu0 %vm2815_vm0, %v2816_v1  ;;  %v447_v3 = vld [vmem:[#allocation5 + $0x8] sm:$0xff]  ;;  %v361_v6 = vld [vmem:[%s3326_s2] sm:$0xff]  ;;  %vm372_vm2 = vcmask 261120  }
  0x57   : > { %v2430_v5 = vpack.c.bf16 %v447_v3, %v446_v2  ;;  %v362_v7 = vld [vmem:[%s3326_s2 + $0x8] sm:$0xff]  ;;  %v363_v9 = vld [vmem:[%s3326_s2 + $0x10] sm:$0xff]  ;;  %v364_v10 = vld [vmem:[%s3326_s2 + $0x18] sm:$0xff]  ;;  %vm582_vm3 = vcmask 31744   ;;  %s2817_s14 = smov 116   ;;  %s2818_s25 = smov 124  }
  0x58   : > { %s3359_s13 = smov (!%p353_p4, %s2176_s13), 3  ;;  %v2425_v8 = vpack.c.bf16 %v362_v7, %v361_v6  ;;  %v2428_v12 = vpack.c.bf16 %v364_v10, %v363_v9  ;;  %v358_v13 = vld [vmem:[%s3020_s16] sm:$0xff]  ;;  %vm3070_vm4 = vmpackc.low %vm582_vm3, %vm582_vm3  ;;  %s2819_s15 = smov 120   ;;  %vm1964_vm5 = vcmask 64512   ;;  %vm1966_vm6 = vcmask 97280  }
  0x59   : > { %s2177_s11 = sshll.u32 %s3359_s13, 3  ;;  %2431 = vmatprep.subr.bf16.mxu1 %v2430_v5  ;;  %v2180_v14 = vld [vmem:[%s3329_s5] ss:$0 sm:$0xff]  ;;  %s2820_s17 = smov 112   ;;  %vm1969_vm7 = vcmask 162816   ;;  %vm1971_vm8 = vcmask 195584  }
  0x5a   : > { %s356_s19 = scalar_lea.vmem %s3325_s1, %s2177_s11  ;;  %2433 = vmatpush3.bf16.msra.mxu1 %v2430_v5  ;;  %2426 = vmatpush3.bf16.msra.mxu0 %v2425_v8  ;;  %v2178_v19 = vld [vmem:[%s3327_s3] ss:$0 sm:$0xff]  ;;  %s2821_s22 = smov 108   ;;  %vm1973_vm9 = vcmask 228352  }
  0x5b   : > { %v359_v4 = vld [vmem:[%s356_s19] sm:$0xff]  ;;  %v360_v11 = vld [vmem:[%s356_s19 + $0x8] sm:$0xff]  ;;  %2427 = vmatprep.subr.bf16.mxu0 %v2814_v0  ;;  %2434 = vmatprep.subr.bf16.mxu1 %v2814_v0  ;;  %s2822_s10 = smov 104   ;;  %s2823_s13 = smov 100  }
  0x5c   : > { %2298 = vmatprep.mubr.msk.f32.mxu1 %vm455_vm1, %v359_v4  ;;  %s2824_s11 = smov 96   ;;  %s2825_s21 = smov 4  }
  0x5d   : > { %2299 = vmatmul.mubr.msk.f32.vlgmr.msra.gmra.mrb[0].mxu1 %vm455_vm1, %v360_v11  ;;  %s2830_s18 = smov 24   ;;  %s2831_s16 = smov 28  }
  0x5e   : > { %2429 = vmatpush3.bf16.msra.mxu0 %v2428_v12  ;;  %2305 = vmatprep.mubr.msk.f32.mxu1 %vm2815_vm0, %v2816_v1 }
  0x5f   : > { %2438 = vmatprep.subr.bf16.mxu0 %v2814_v0 }
  0x61   : > { %2292 = vmatmul.mubr.msk.f32.vlgmr.msra.gmra.mrb[0].mxu0 %vm372_vm2, %v358_v13 }
  0x62   : > { %2312 = vmatprep.mubr.msk.f32.mxu0 %vm2815_vm0, %v2816_v1 }
 0x130   : > { %v2300_v15 = vpop.f32.mrb[0].mxu1 }
 0x131   : > { %v534_v16 = vadd.f32 %v2300_v15, %v2180_v14  ;;  %v528_v17 = vpop.f32.mrb[1].mxu1 }
 0x132   : > { %v529_v18 = vadd.f32 %v2180_v14, %v528_v17 }
 0x134   : > { %v3066_v20 = vpack.i.bf16 %v534_v16, %v529_v18  ;;  %v2435_v21 = vpack.c.bf16 %v534_v16, %v529_v18  ;;  %v442_v23 = vpop.f32.mrb[0].mxu0 }
 0x135   : > { %v2293_v24 = vpop.f32.mrb[1].mxu0  ;;  %v443_v25 = vadd.f32 %v2178_v19, %v442_v23 }
 0x136   : > { %2584 = vrot.lane.b32.xlu1 %v3066_v20, %s2817_s14  ;;  %2574 = vrot.lane.b32.xlu0 %v3066_v20, %s2818_s25 }
 0x137   : > { %2437 = vmatpush3.bf16.xpose.msk.msra.mxu1 %vm3070_vm4, %v2435_v21 }
 0x138   : > { %2442 = vmatprep.subr.bf16.mxu1 %v2814_v0 }
 0x13a   : > { %2579 = vrot.lane.b32.xlu0 %v3066_v20, %s2819_s15  ;;  %538 = vrot.lane.b32.xlu1 %v443_v25, %s2818_s25  ;;  %s2826_s25 = smov 8  }
 0x13e   : > { %2306 = vmatmul.mubr.msk.f32.vlgmr.msra.gmra.mrb[2].mxu1 %vm582_vm3, %v443_v25  ;;  %2589 = vrot.lane.b32.xlu0 %v3066_v20, %s2820_s17 }
 0x13f   : > { %2594 = vrot.lane.b32.xlu1 %v3066_v20, %s2821_s22  ;;  %2319 = vmatprep.mubr.msk.f32.mxu1 %vm2815_vm0, %v2816_v1 }
 0x142   : > { %540 = vrot.lane.b32.xlu0 %v443_v25, %s2819_s15  ;;  %s351_s15 = scalar_lea.vmem [#allocation7], %s2173_s26  ;;  %s2832_s26 = smov [#allocation7]  }
 0x143   : > { %542 = vrot.lane.b32.xlu1 %v443_v25, %s2817_s14 }
 0x146   : > { %2599 = vrot.lane.b32.xlu0 %v3066_v20, %s2822_s10 }
 0x147   : > { %2604 = vrot.lane.b32.xlu1 %v3066_v20, %s2823_s13 }
 0x14a   : > { %544 = vrot.lane.b32.xlu0 %v443_v25, %s2820_s17  ;;  %s2074_s17 = sshll.u32 %s351_s15, 4  ;;  %s3281_s17 = int_to_ptr.vmem [resolvable:$true] %s2074_s17 }
 0x14b   : > { %546 = vrot.lane.b32.xlu1 %v443_v25, %s2821_s22 }
 0x14e   : > { %548 = vrot.lane.b32.xlu0 %v443_v25, %s2822_s10 }
 0x14f   : > { %550 = vrot.lane.b32.xlu1 %v443_v25, %s2823_s13  ;;  %s2827_s13 = smov 12  }
 0x1a8   : > { %v3087_v26 = vpop.permute.xlu1 %2584  ;;  %v3089_v27 = vpop.permute.xlu0 %2574 }
 0x1a9   : > { %v2587_v28 = vunpack.i.h.bf16 %v3087_v26  ;;  %v2586_v29 = vunpack.i.l.bf16 %v3087_v26  ;;  %v2577_v30 = vunpack.i.h.bf16 %v3089_v27  ;;  %v2576_v31 = vunpack.i.l.bf16 %v3089_v27 }
 0x1ab   : > { %v2439_v32 = vpack.c.bf16 %v2577_v30, %v2576_v31  ;;  %v2447_v44 = vpack.c.bf16 %v2587_v28, %v2586_v29 }
 0x1ac   : > { %v3095_v33 = vpop.permute.xlu0 %2579  ;;  %v539_v34 = vpop.permute.xlu1 %538 }
 0x1ad   : > { %v2582_v35 = vunpack.i.h.bf16 %v3095_v33  ;;  %v2581_v36 = vunpack.i.l.bf16 %v3095_v33  ;;  %2441 = vmatpush3.bf16.xpose.msk.msra.mxu0 %vm3070_vm4, %v2439_v32 }
 0x1ae   : > { %2446 = vmatprep.subr.bf16.mxu0 %v2814_v0 }
 0x1af   : > { %v2443_v37 = vpack.c.bf16 %v2582_v35, %v2581_v36 }
 0x1b0   : > { %v3102_v38 = vpop.permute.xlu0 %2589 }
 0x1b1   : > { %v2592_v39 = vunpack.i.h.bf16 %v3102_v38  ;;  %v2591_v40 = vunpack.i.l.bf16 %v3102_v38  ;;  %v3106_v41 = vpop.permute.xlu1 %2594  ;;  %2445 = vmatpush3.bf16.xpose.msk.msra.mxu1 %vm3070_vm4, %v2443_v37 }
 0x1b2   : > { %v2597_v42 = vunpack.i.h.bf16 %v3106_v41  ;;  %v2596_v43 = vunpack.i.l.bf16 %v3106_v41  ;;  %2450 = vmatprep.subr.bf16.mxu1 %v2814_v0 }
 0x1b3   : > { %v2451_v47 = vpack.c.bf16 %v2592_v39, %v2591_v40 }
 0x1b4   : > { %v541_v45 = vpop.permute.xlu0 %540  ;;  %2313 = vmatmul.mubr.msk.f32.vlgmr.msra.gmra.mrb[2].mxu0 %vm582_vm3, %v539_v34  ;;  %v2455_v54 = vpack.c.bf16 %v2597_v42, %v2596_v43 }
 0x1b5   : > { %v543_v46 = vpop.permute.xlu1 %542  ;;  %2449 = vmatpush3.bf16.xpose.msk.msra.mxu0 %vm3070_vm4, %v2447_v44  ;;  %2326 = vmatprep.mubr.msk.f32.mxu0 %vm2815_vm0, %v2816_v1 }
 0x1b6   : > { %2454 = vmatprep.subr.bf16.mxu0 %v2814_v0 }
 0x1b8   : > { %v3119_v48 = vpop.permute.xlu0 %2599  ;;  %2320 = vmatmul.mubr.msk.f32.vlgmr.msra.gmra.mrb[4].mxu1 %vm582_vm3, %v541_v45 }
 0x1b9   : > { %v2602_v49 = vunpack.i.h.bf16 %v3119_v48  ;;  %v2601_v50 = vunpack.i.l.bf16 %v3119_v48  ;;  %v3124_v51 = vpop.permute.xlu1 %2604  ;;  %2453 = vmatpush3.bf16.xpose.msk.msra.mxu1 %vm3070_vm4, %v2451_v47  ;;  %2333 = vmatprep.mubr.msk.f32.mxu1 %vm2815_vm0, %v2816_v1 }
 0x1ba   : > { %v2607_v52 = vunpack.i.h.bf16 %v3124_v51  ;;  %v2606_v53 = vunpack.i.l.bf16 %v3124_v51  ;;  %2458 = vmatprep.subr.bf16.mxu1 %v2814_v0 }
 0x1bb   : > { %v2459_v55 = vpack.c.bf16 %v2602_v49, %v2601_v50 }
 0x1bc   : > { %2327 = vmatmul.mubr.msk.f32.vlgmr.msra.gmra.mrb[4].mxu0 %vm582_vm3, %v543_v46  ;;  %v545_v56 = vpop.permute.xlu0 %544  ;;  %v2463_v57 = vpack.c.bf16 %v2607_v52, %v2606_v53 }
 0x1bd   : > { %2457 = vmatpush3.bf16.xpose.msk.msra.mxu0 %vm3070_vm4, %v2455_v54  ;;  %2340 = vmatprep.mubr.msk.f32.mxu0 %vm2815_vm0, %v2816_v1  ;;  %v547_v58 = vpop.permute.xlu1 %546 }
 0x1be   : > { %2462 = vmatprep.subr.bf16.mxu0 %v2814_v0 }
 0x1c0   : > { %2334 = vmatmul.mubr.msk.f32.vlgmr.msra.gmra.mrb[6].mxu1 %vm582_vm3, %v545_v56  ;;  %v549_v59 = vpop.permute.xlu0 %548 }
 0x1c1   : > { %2461 = vmatpush3.bf16.xpose.msk.msra.mxu1 %vm3070_vm4, %v2459_v55  ;;  %2347 = vmatprep.mubr.msk.f32.mxu1 %vm2815_vm0, %v2816_v1  ;;  %v551_v60 = vpop.permute.xlu1 %550 }
 0x1c2   : > { %2466 = vmatprep.subr.bf16.mxu1 %v2814_v0 }
 0x1c4   : > { %2341 = vmatmul.mubr.msk.f32.vlgmr.msra.gmra.mrb[6].mxu0 %vm582_vm3, %v547_v58 }
 0x1c5   : > { %2465 = vmatpush3.bf16.xpose.msk.msra.mxu0 %vm3070_vm4, %v2463_v57  ;;  %2354 = vmatprep.mubr.msk.f32.mxu0 %vm2815_vm0, %v2816_v1 }
 0x1c6   : > { %2469 = vmatprep.subr.bf16.mxu0 %v2814_v0 }
 0x1c8   : > { %2348 = vmatmul.mubr.msk.f32.vlgmr.msra.gmra.mrb[8].mxu1 %vm582_vm3, %v549_v59 }
 0x1c9   : > { %2361 = vmatprep.mubr.msk.f32.mxu1 %vm2815_vm0, %v2816_v1 }
 0x1cc   : > { %2355 = vmatmul.mubr.msk.f32.vlgmr.msra.gmra.mrb[8].mxu0 %vm582_vm3, %v551_v60 }
 0x1cd   : > { %2368 = vmatprep.mubr.msk.f32.mxu0 %vm2815_vm0, %v2816_v1 }
 0x211   : > { %v655_v61 = vpop.f32.mrb[2].mxu1 }
 0x212   : > { %v1191_v62 = vsel %vm455_vm1, %v655_v61, -inf  ;;  %v2307_v63 = vpop.f32.mrb[3].mxu1 }
 0x213   : > { %1192 = vmax.xlane.f32.xlu0 %v1191_v62 }
 0x287   : > { %v731_v2 = vpop.f32.mrb[2].mxu0 }
 0x288   : > { %v2314_v3 = vpop.f32.mrb[3].mxu0  ;;  %v1194_v4 = vsel %vm455_vm1, %v731_v2, -inf }
 0x289   : > { %1195 = vmax.xlane.f32.xlu1 %v1194_v4 }
 0x28b   : > { %v807_v5 = vpop.f32.mrb[4].mxu1 }
 0x28c   : > { %v2321_v6 = vpop.f32.mrb[5].mxu1  ;;  %v1197_v7 = vsel %vm455_vm1, %v807_v5, -inf }
 0x28d   : > { %1198 = vmax.xlane.f32.xlu0 %v1197_v7 }
 0x28f   : > { %v883_v8 = vpop.f32.mrb[4].mxu0 }
 0x290   : > { %v2328_v9 = vpop.f32.mrb[5].mxu0  ;;  %v1200_v10 = vsel %vm455_vm1, %v883_v8, -inf }
 0x291   : > { %1201 = vmax.xlane.f32.xlu0 %v1200_v10 }
 0x293   : > { %v959_v11 = vpop.f32.mrb[6].mxu1 }
 0x294   : > { %v2335_v12 = vpop.f32.mrb[7].mxu1  ;;  %v1203_v13 = vsel %vm455_vm1, %v959_v11, -inf }
 0x295   : > { %1204 = vmax.xlane.f32.xlu1 %v1203_v13 }
 0x297   : > { %v1035_v14 = vpop.f32.mrb[6].mxu0 }
 0x298   : > { %v2342_v15 = vpop.f32.mrb[7].mxu0  ;;  %v1206_v16 = vsel %vm455_vm1, %v1035_v14, -inf }
 0x299   : > { %1207 = vmax.xlane.f32.xlu0 %v1206_v16 }
 0x29b   : > { %v1111_v17 = vpop.f32.mrb[8].mxu1 }
 0x29c   : > { %v2349_v18 = vpop.f32.mrb[9].mxu1  ;;  %v1209_v19 = vsel %vm455_vm1, %v1111_v17, -inf }
 0x29d   : > { %1210 = vmax.xlane.f32.xlu1 %v1209_v19 }
 0x29f   : > { %v1187_v21 = vpop.f32.mrb[8].mxu0 }
 0x2a0   : > { %v2356_v22 = vpop.f32.mrb[9].mxu0  ;;  %v1212_v23 = vsel %vm455_vm1, %v1187_v21, -inf  ;;  %v1193_v24 = vpop.xlane.xlu0 %1192 }
 0x2a1   : > { %1213 = vmax.xlane.f32.xlu0 %v1212_v23  ;;  %v1215_v25 = vsub.f32 %v655_v61, %v1193_v24 }
 0x2a3   : > { %v1223_v28 = vmul.f32 1.442695, %v1215_v25 }
 0x2a5   : > { %2648 = vpow2.f32 %v1223_v28 }
 0x2ae   : > { %2609 = vrot.lane.b32.xlu1 %v3066_v20, %s2824_s11 }
 0x2af   : > { %v3177_v20 = vpop.eup %2648 }
 0x2b0   : > { %v1239_v29 = vsel %vm455_vm1, %v3177_v20, 0.0 }
 0x2b2   : > { %2619 = vrot.lane.b32.xlu1 %v3095_v33, %s2824_s11 }
 0x2b6   : > { %2624 = vrot.lane.b32.xlu1 %v3087_v26, %s2824_s11 }
 0x2b7   : > { %2614 = vrot.lane.b32.xlu0 %v3089_v27, %s2824_s11 }
 0x2ba   : > { %2634 = vrot.lane.b32.xlu1 %v3106_v41, %s2824_s11 }
 0x2bb   : > { %2629 = vrot.lane.b32.xlu0 %v3102_v38, %s2824_s11 }
 0x2de   : > { %1240 = vadd.xlane.f32.xlu1 %v1239_v29 }
 0x316   : > { %v1196_v26 = vpop.xlane.xlu1 %1195 }
 0x317   : > { %v1216_v30 = vsub.f32 %v731_v2, %v1196_v26 }
 0x319   : > { %v1225_v31 = vmul.f32 1.442695, %v1216_v30 }
 0x31a   : > { %v1199_v27 = vpop.xlane.xlu0 %1198 }
 0x31b   : > { %2650 = vpow2.f32 %v1225_v31  ;;  %v1217_v32 = vsub.f32 %v807_v5, %v1199_v27 }
 0x31d   : > { %v1227_v33 = vmul.f32 1.442695, %v1217_v32 }
 0x31e   : > { %v1202_v34 = vpop.xlane.xlu0 %1201 }
 0x31f   : > { %2652 = vpow2.f32 %v1227_v33  ;;  %v1218_v35 = vsub.f32 %v883_v8, %v1202_v34 }
 0x321   : > { %v1229_v36 = vmul.f32 1.442695, %v1218_v35 }
 0x322   : > { %v1205_v37 = vpop.xlane.xlu1 %1204 }
 0x323   : > { %2654 = vpow2.f32 %v1229_v36  ;;  %v1219_v38 = vsub.f32 %v959_v11, %v1205_v37 }
 0x325   : > { %v3181_v39 = vpop.eup %2650  ;;  %v1231_v40 = vmul.f32 1.442695, %v1219_v38 }
 0x326   : > { %v1208_v41 = vpop.xlane.xlu0 %1207  ;;  %v1242_v42 = vsel %vm455_vm1, %v3181_v39, 0.0 }
 0x327   : > { %2656 = vpow2.f32 %v1231_v40  ;;  %v1220_v43 = vsub.f32 %v1035_v14, %v1208_v41  ;;  %1243 = vadd.xlane.f32.xlu0 %v1242_v42 }
 0x329   : > { %v3185_v44 = vpop.eup %2652  ;;  %v1233_v45 = vmul.f32 1.442695, %v1220_v43 }
 0x32a   : > { %v1211_v46 = vpop.xlane.xlu1 %1210  ;;  %v1245_v47 = vsel %vm455_vm1, %v3185_v44, 0.0 }
 0x32b   : > { %2658 = vpow2.f32 %v1233_v45  ;;  %v1221_v49 = vsub.f32 %v1111_v17, %v1211_v46  ;;  %1246 = vadd.xlane.f32.xlu1 %v1245_v47 }
 0x32d   : > { %v3189_v50 = vpop.eup %2654  ;;  %v1235_v52 = vmul.f32 1.442695, %v1221_v49 }
 0x32e   : > { %v2610_v53 = vpop.permute.xlu1 %2609  ;;  %v1214_v54 = vpop.xlane.xlu0 %1213  ;;  %v1248_v55 = vsel %vm455_vm1, %v3189_v50, 0.0 }
 0x32f   : > { %2660 = vpow2.f32 %v1235_v52  ;;  %v2612_v56 = vunpack.i.h.bf16 %v2610_v53  ;;  %v2611_v57 = vunpack.i.l.bf16 %v2610_v53  ;;  %v1222_v58 = vsub.f32 %v1187_v21, %v1214_v54  ;;  %1249 = vadd.xlane.f32.xlu0 %v1248_v55 }
 0x331   : > { %v3193_v59 = vpop.eup %2656  ;;  %v2467_v60 = vpack.c.bf16 %v2612_v56, %v2611_v57  ;;  %v1237_v61 = vmul.f32 1.442695, %v1222_v58 }
 0x332   : > { %v2615_v62 = vpop.permute.xlu0 %2614  ;;  %v1251_v63 = vsel %vm455_vm1, %v3193_v59, 0.0  ;;  %v2620_v11 = vpop.permute.xlu1 %2619 }
 0x333   : > { %2662 = vpow2.f32 %v1237_v61  ;;  %v2617_v2 = vunpack.i.h.bf16 %v2615_v62  ;;  %1252 = vadd.xlane.f32.xlu1 %v1251_v63  ;;  %2468 = vmatpush3.bf16.msra.mxu1 %v2467_v60  ;;  %v2616_v3 = vunpack.i.l.bf16 %v2615_v62  ;;  %v2622_v18 = vunpack.i.h.bf16 %v2620_v11 }
 0x334   : > { %2472 = vmatprep.subr.bf16.mxu1 %v2814_v0  ;;  %v2621_v19 = vunpack.i.l.bf16 %v2620_v11 }
 0x335   : > { %v3198_v4 = vpop.eup %2658  ;;  %v2470_v5 = vpack.c.bf16 %v2617_v2, %v2616_v3 }
 0x336   : > { %v1254_v6 = vsel %vm455_vm1, %v3198_v4, 0.0  ;;  %v2625_v12 = vpop.permute.xlu1 %2624  ;;  %v2473_v23 = vpack.c.bf16 %v2622_v18, %v2621_v19 }
 0x337   : > { %1255 = vadd.xlane.f32.xlu0 %v1254_v6  ;;  %2471 = vmatpush3.bf16.msra.mxu0 %v2470_v5  ;;  %v2627_v31 = vunpack.i.h.bf16 %v2625_v12  ;;  %v2626_v27 = vunpack.i.l.bf16 %v2625_v12 }
 0x338   : > { %2475 = vmatprep.subr.bf16.mxu0 %v2814_v0 }
 0x339   : > { %v3202_v7 = vpop.eup %2660  ;;  %v2476_v38 = vpack.c.bf16 %v2627_v31, %v2626_v27 }
 0x33a   : > { %v1257_v8 = vsel %vm455_vm1, %v3202_v7, 0.0  ;;  %v3215_v13 = vpop.permute.xlu1 %2634 }
 0x33b   : > { %1258 = vadd.xlane.f32.xlu1 %v1257_v8  ;;  %v2637_v52 = vunpack.i.h.bf16 %v3215_v13  ;;  %v2636_v53 = vunpack.i.l.bf16 %v3215_v13 }
 0x33d   : > { %v3207_v9 = vpop.eup %2662  ;;  %v2482_v60 = vpack.c.bf16 %v2637_v52, %v2636_v53 }
 0x33e   : > { %v1260_v10 = vsel %vm455_vm1, %v3207_v9, 0.0 }
 0x33f   : > { %1261 = vadd.xlane.f32.xlu0 %v1260_v10 }
 0x34c   : > { %2644 = vrot.lane.b32.xlu1 %v3124_v51, %s2824_s11 }
 0x355   : > { %2639 = vrot.lane.b32.xlu0 %v3119_v48, %s2824_s11  ;;  %v2630_v48 = vpop.permute.xlu0 %2629  ;;  %s2828_s11 = smov 16  }
 0x356   : > { %v2632_v40 = vunpack.i.h.bf16 %v2630_v48  ;;  %v2631_v41 = vunpack.i.l.bf16 %v2630_v48 }
 0x358   : > { %v2479_v49 = vpack.c.bf16 %v2632_v40, %v2631_v41 }
 0x36b   : > { %v1241_v14 = vpop.xlane.xlu1 %1240 }
 0x36c   : > { %2664 = vrcp.f32 %v1241_v14 }
 0x376   : > { %v2665_v15 = vpop.eup %2664 }
 0x377   : > { %v1271_v16 = vmul.f32 %v2665_v15, %v1241_v14 }
 0x379   : > { %v1279_v17 = vsub.f32 2.0, %v1271_v16 }
 0x37b   : > { %v1287_v21 = vmul.f32 %v2665_v15, %v1279_v17 }
 0x37d   : > { %v1295_v22 = vmul.f32 %v3177_v20, %v1287_v21 }
 0x37f   : > { %2362 = vmatmul.mubr.msk.f32.vlgmr.msra.gmra.mrb[10].mxu1 %vm455_vm1, %v1295_v22 }
 0x380   : > { %2474 = vmatpush3.bf16.msra.mxu1 %v2473_v23  ;;  %2375 = vmatprep.mubr.msk.f32.mxu1 %vm2815_vm0, %v2816_v1 }
 0x381   : > { %2478 = vmatprep.subr.bf16.mxu1 %v2814_v0 }
 0x3b4   : > { %v1244_v51 = vpop.xlane.xlu0 %1243 }
 0x3b5   : > { %2666 = vrcp.f32 %v1244_v51 }
 0x3b8   : > { %v1247_v24 = vpop.xlane.xlu1 %1246 }
 0x3b9   : > { %2668 = vrcp.f32 %v1247_v24 }
 0x3bc   : > { %v1250_v25 = vpop.xlane.xlu0 %1249 }
 0x3bd   : > { %2670 = vrcp.f32 %v1250_v25 }
 0x3bf   : > { %v2667_v28 = vpop.eup %2666 }
 0x3c0   : > { %v1272_v29 = vmul.f32 %v2667_v28, %v1244_v51  ;;  %v1253_v26 = vpop.xlane.xlu1 %1252 }
 0x3c1   : > { %2672 = vrcp.f32 %v1253_v26 }
 0x3c2   : > { %v1280_v20 = vsub.f32 2.0, %v1272_v29  ;;  %v1976_v29 = vld [vmem:[%s3330_s6 + $0x8] sm:$0xff] }
 0x3c3   : > { %v2669_v30 = vpop.eup %2668 }
 0x3c4   : > { %v1288_v32 = vmul.f32 %v2667_v28, %v1280_v20  ;;  %v1273_v33 = vmul.f32 %v2669_v30, %v1247_v24  ;;  %v1256_v34 = vpop.xlane.xlu0 %1255  ;;  %v1977_v20 = vld [vmem:[%s3330_s6 + $0x10] sm:$0xff] }
 0x3c5   : > { %2674 = vrcp.f32 %v1256_v34 }
 0x3c6   : > { %v1296_v35 = vmul.f32 %v3181_v39, %v1288_v32  ;;  %v1281_v36 = vsub.f32 2.0, %v1273_v33 }
 0x3c7   : > { %v2671_v37 = vpop.eup %2670 }
 0x3c8   : > { %v1289_v42 = vmul.f32 %v2669_v30, %v1281_v36  ;;  %v1274_v43 = vmul.f32 %v2671_v37, %v1250_v25  ;;  %v1259_v45 = vpop.xlane.xlu1 %1258  ;;  %2369 = vmatmul.mubr.msk.f32.vlgmr.msra.gmra.mrb[10].mxu0 %vm455_vm1, %v1296_v35  ;;  %v1978_v30 = vld [vmem:[%s3330_s6 + $0x18] sm:$0xff] }
 0x3c9   : > { %2676 = vrcp.f32 %v1259_v45  ;;  %2477 = vmatpush3.bf16.msra.mxu0 %v2476_v38  ;;  %2382 = vmatprep.mubr.msk.f32.mxu0 %vm2815_vm0, %v2816_v1  ;;  %v2494_v27 = vpack.c.bf16 %v1978_v30, %v1977_v20 }
 0x3ca   : > { %v1297_v46 = vmul.f32 %v3185_v44, %v1289_v42  ;;  %v1282_v47 = vsub.f32 2.0, %v1274_v43  ;;  %2481 = vmatprep.subr.bf16.mxu0 %v2814_v0 }
 0x3cb   : > { %v2673_v39 = vpop.eup %2672 }
 0x3cc   : > { %v1290_v54 = vmul.f32 %v2671_v37, %v1282_v47  ;;  %v1275_v55 = vmul.f32 %v2673_v39, %v1253_v26  ;;  %2376 = vmatmul.mubr.msk.f32.vlgmr.msra.gmra.mrb[12].mxu1 %vm455_vm1, %v1297_v46  ;;  %v1262_v56 = vpop.xlane.xlu0 %1261  ;;  %v2645_v63 = vpop.permute.xlu1 %2644 }
 0x3cd   : > { %2678 = vrcp.f32 %v1262_v56  ;;  %2480 = vmatpush3.bf16.msra.mxu1 %v2479_v49  ;;  %2389 = vmatprep.mubr.msk.f32.mxu1 %vm2815_vm0, %v2816_v1  ;;  %v2647_v10 = vunpack.i.h.bf16 %v2645_v63  ;;  %v2646_v11 = vunpack.i.l.bf16 %v2645_v63 }
 0x3ce   : > { %v1298_v44 = vmul.f32 %v3189_v50, %v1290_v54  ;;  %v1283_v57 = vsub.f32 2.0, %v1275_v55  ;;  %2484 = vmatprep.subr.bf16.mxu1 %v2814_v0 }
 0x3cf   : > { %v2675_v58 = vpop.eup %2674  ;;  %v2488_v17 = vpack.c.bf16 %v2647_v10, %v2646_v11 }
 0x3d0   : > { %v1291_v61 = vmul.f32 %v2673_v39, %v1283_v57  ;;  %v1276_v62 = vmul.f32 %v2675_v58, %v1256_v34  ;;  %v2640_v2 = vpop.permute.xlu0 %2639  ;;  %2383 = vmatmul.mubr.msk.f32.vlgmr.msra.gmra.mrb[12].mxu0 %vm455_vm1, %v1298_v44  ;;  %v2215_v44 = vld [vmem:[%s3331_s7] ss:$0 sm:$0xff] }
 0x3d1   : > { %v2642_v3 = vunpack.i.h.bf16 %v2640_v2  ;;  %v2641_v5 = vunpack.i.l.bf16 %v2640_v2  ;;  %2483 = vmatpush3.bf16.msra.mxu0 %v2482_v60  ;;  %2396 = vmatprep.mubr.msk.f32.mxu0 %vm2815_vm0, %v2816_v1 }
 0x3d2   : > { %v1299_v6 = vmul.f32 %v3193_v59, %v1291_v61  ;;  %v1284_v50 = vsub.f32 2.0, %v1276_v62  ;;  %2487 = vmatprep.subr.bf16.mxu0 %v2814_v0 }
 0x3d3   : > { %v2677_v8 = vpop.eup %2676  ;;  %v2485_v12 = vpack.c.bf16 %v2642_v3, %v2641_v5 }
 0x3d4   : > { %v1292_v13 = vmul.f32 %v2675_v58, %v1284_v50  ;;  %v1277_v14 = vmul.f32 %v2677_v8, %v1259_v45  ;;  %2390 = vmatmul.mubr.msk.f32.vlgmr.msra.gmra.mrb[14].mxu1 %vm455_vm1, %v1299_v6 }
 0x3d5   : > { %2486 = vmatpush3.bf16.msra.mxu1 %v2485_v12  ;;  %2403 = vmatprep.mubr.msk.f32.mxu1 %vm2815_vm0, %v2816_v1 }
 0x3d6   : > { %v1300_v15 = vmul.f32 %v3198_v4, %v1292_v13  ;;  %v1285_v16 = vsub.f32 2.0, %v1277_v14  ;;  %2490 = vmatprep.subr.bf16.mxu1 %v2814_v0 }
 0x3d7   : > { %v2679_v59 = vpop.eup %2678 }
 0x3d8   : > { %v1293_v18 = vmul.f32 %v2677_v8, %v1285_v16  ;;  %v1278_v19 = vmul.f32 %v2679_v59, %v1262_v56  ;;  %2397 = vmatmul.mubr.msk.f32.vlgmr.msra.gmra.mrb[14].mxu0 %vm455_vm1, %v1300_v15 }
 0x3d9   : > { %2489 = vmatpush3.bf16.msra.mxu0 %v2488_v17  ;;  %2410 = vmatprep.mubr.msk.f32.mxu0 %vm2815_vm0, %v2816_v1 }
 0x3da   : > { %v1301_v21 = vmul.f32 %v3202_v7, %v1293_v18  ;;  %v1286_v22 = vsub.f32 2.0, %v1278_v19  ;;  %v1975_v7 = vld [vmem:[%s3330_s6] sm:$0xff] }
 0x3dc   : > { %v1294_v23 = vmul.f32 %v2679_v59, %v1286_v22  ;;  %2404 = vmatmul.mubr.msk.f32.vlgmr.msra.gmra.mrb[16].mxu1 %vm455_vm1, %v1301_v21 }
 0x3dd   : > { %2421 = vmatprep.mubr.msk.f32.mxu1 %vm2815_vm0, %v2816_v1 }
 0x3de   : > { %v1302_v4 = vmul.f32 %v3207_v9, %v1294_v23  ;;  %v2491_v9 = vpack.c.bf16 %v1976_v29, %v1975_v7 }
 0x3e0   : > { %2411 = vmatmul.mubr.msk.f32.vlgmr.msra.gmra.mrb[16].mxu0 %vm455_vm1, %v1302_v4  ;;  %2492 = vmatpush3.bf16.msra.mxu1 %v2491_v9 }
 0x3e1   : > { %2493 = vmatprep.subr.bf16.mxu1 %v2814_v0 }
 0x3e4   : > { %2495 = vmatpush3.bf16.msra.mxu1 %v2494_v27 }
 0x452   : > { %v1378_v48 = vpop.f32.mrb[10].mxu1 }
 0x453   : > { %v2363_v51 = vpop.f32.mrb[11].mxu1 }
 0x49b   : > { %v1457_v24 = vpop.f32.mrb[10].mxu0 }
 0x49c   : > { %1936 = vrot.lane.b32.xlu0 %v1457_v24, %s2825_s21  ;;  %v2370_v25 = vpop.f32.mrb[11].mxu0  ;;  %s2829_s21 = smov 20  }
 0x49f   : > { %v1536_v28 = vpop.f32.mrb[12].mxu1 }
 0x4a0   : > { %1940 = vrot.lane.b32.xlu1 %v1536_v28, %s2826_s25  ;;  %v2377_v1 = vpop.f32.mrb[13].mxu1  ;;  %s2218_s25 = sshll.u32 %s2899_s9, 7  ;;  %s2738_s9 = scalar_lea.vmem %s3281_s17, 128 }
 0x4a1   : > { %p2739_p6 = scmp.ne.s32.totalorder %s3281_s17, %s2738_s9 }
 0x4a3   : > { %v1615_v26 = vpop.f32.mrb[12].mxu0  ;;  %p2740_p8 = pnand %p2739_p6, %p2969_p12 }
 0x4a4   : > { %1944 = vrot.lane.b32.xlu0 %v1615_v26, %s2827_s13  ;;  %v2384_v31 = vpop.f32.mrb[13].mxu0  ;;  %s3279_s13 = scalar_lea.hbm %s3332_s8, %s2218_s25 }
 0x4a5   : > { %p2741_p10 = pneg %p2740_p8 }
 0x4a7   : > { %v1694_v32 = vpop.f32.mrb[14].mxu1 }
 0x4a8   : > { %1948 = vrot.lane.b32.xlu1 %v1694_v32, %s2828_s11  ;;  %v2391_v33 = vpop.f32.mrb[15].mxu1  ;;  %s2061_s11 = scalar_lea.sflag [#allocation4], %s3014_s20 }
 0x4ab   : > { %v1773_v34 = vpop.f32.mrb[14].mxu0 }
 0x4ac   : > { %1952 = vrot.lane.b32.xlu0 %v1773_v34, %s2829_s21  ;;  %v2398_v0 = vpop.f32.mrb[15].mxu0  ;;  %s2742_s21 = sshll.u32 %s2832_s26, 4  ;;  %s2743_s21 = int_to_ptr.vmem [resolvable:$false] %s2742_s21 }
 0x4ad   : > { %p2745_p13 = scmp.lt.s32.totalorder %s3281_s17, %s2743_s21 }
 0x4af   : > { %v1852_v35 = vpop.f32.mrb[16].mxu1 }
 0x4b0   : > { %1956 = vrot.lane.b32.xlu1 %v1852_v35, %s2830_s18  ;;  %v2405_v36 = vpop.f32.mrb[17].mxu1  ;;  %s2744_s18 = scalar_lea.vmem %s2743_s21, 256 }
 0x4b1   : > { %p2746_p3 = scmp.lt.s32.totalorder %s2744_s18, %s2738_s9 }
 0x4b3   : > { %v1931_v37 = vpop.f32.mrb[16].mxu0  ;;  %p2747_p7 = por %p2746_p3, %p2745_p13 }
 0x4b4   : > { %1960 = vrot.lane.b32.xlu0 %v1931_v37, %s2831_s16  ;;  %v2412_v38 = vpop.f32.mrb[17].mxu0 }
 0x4b5   : > { %p2748_p9 = pnand %p2747_p7, %p2741_p10 }
 0x50e   : > { %v1937_v40 = vpop.permute.xlu0 %1936 }
 0x50f   : > { %v1963_v45 = vsel %vm582_vm3, %v1378_v48, %v1937_v40 }
 0x512   : > { %v1941_v41 = vpop.permute.xlu1 %1940 }
 0x513   : > { %v1965_v46 = vsel %vm1964_vm5, %v1963_v45, %v1941_v41 }
 0x516   : > { %v1945_v42 = vpop.permute.xlu0 %1944 }
 0x517   : > { %v1967_v39 = vsel %vm1966_vm6, %v1965_v46, %v1945_v42 }
 0x51a   : > { %v1949_v43 = vpop.permute.xlu1 %1948 }
 0x51b   : > { %v1968_v52 = vsel %vm455_vm1, %v1967_v39, %v1949_v43 }
 0x51e   : > { %v1953_v47 = vpop.permute.xlu0 %1952 }
 0x51f   : > { %v1970_v53 = vsel %vm1969_vm7, %v1968_v52, %v1953_v47 }
 0x522   : > { %v1957_v49 = vpop.permute.xlu1 %1956 }
 0x523   : > { %v1972_v54 = vsel %vm1971_vm8, %v1970_v53, %v1957_v49 }
 0x526   : > { %v1961_v55 = vpop.permute.xlu0 %1960 }
 0x527   : > { %v1974_v56 = vsel %vm1973_vm9, %v1972_v54, %v1961_v55 }
 0x528   : > { %2422 = vmatmul.mubr.msk.f32.vlgmr.msra.gmra.mrb[18].mxu1 %vm372_vm2, %v1974_v56 }
 0x5fb   : > { %v2055_v57 = vpop.f32.mrb[18].mxu1 }
 0x5fc   : > { %v2056_v58 = vadd.f32 %v2215_v44, %v2055_v57  ;;  %v2423_v60 = vpop.f32.mrb[19].mxu1 }
 0x5fe   : > { %2059 = vst.msk [vmem:[%s351_s15] sm:$0xff] %vm372_vm2, %v2056_v58 }
 0x5ff   : > { %2751 = shalt.err (!%p2748_p9)
}
 0x600   : > { %s2752_s20 = scalar_lea.hbm %s3279_s13, 128  ;;  %s2756_s14 = scalar_lea.hbm %s3332_s8, 256 }
 0x601   : > { %p2753_p2 = scmp.ne.s32.totalorder %s3279_s13, %s2752_s20  ;;  %p2757_p11 = scmp.lt.u32.totalorder %s3279_s13, %s3332_s8 }
 0x602   : > { %p2758_p1 = scmp.lt.u32.totalorder %s2756_s14, %s2752_s20  ;;  %p2760_p6 = scmp.lt.u32.totalorder %s2752_s20, %s3279_s13 }
 0x603   : > { %p2754_p5 = pnand %p2753_p2, %p2969_p12 }
 0x604   : > { %p2759_p4 = por %p2758_p1, %p2757_p11 }
 0x605   : > { %p2755_p0 = pneg %p2754_p5 }
 0x606   : > { %p2761_p8 = por %p2760_p6, %p2759_p4 }
 0x608   : > { %p2762_p10 = pnand %p2761_p8, %p2755_p0 }
 0x60a   : > { %2765 = shalt.err (!%p2762_p10)
}
 0x60b   : > { %2502 = dma.vmem_to_hbm [thread:$0]  (%p2969_p12), %s3281_s17, 128, %s3279_s13, %s2061_s11  }
 0x60c PF: > { %s2086_s22 = sand.u32 1, %s2796_s27   ;;  %p3352_p13 = scmp.ne.s32.totalorder %s3339_s12, 0 }
 0x60d   : > { %p3353_p3 = scmp.ge.s32.totalorder %s2808_s30, 2  ;;  %s2087_s10 = scalar_lea.sflag [#allocation4], %s2086_s22 }
 0x60f   : > { %p2513_p7 = pnand %p3353_p3, %p3352_p13 }
 0x611   : > { %2791 = dma.done.wait (!%p2513_p7), %s2087_s10, 128  }
 0x612   : > { %2793 = vsyncadd (!%p2513_p7), %s2087_s10, 4294967168  ;;  %s3354_s30 = sld [smem:[#allocation11_spill]]  ;;  %s3355_s27 = smov %s2800_s28 }
 0x613   : > { %s3356_s28 = smov %s2804_s29  ;;  %s3357_s29 = smov %s2965_s23 }
 0x618   : > { %p22_p9 = scmp.ge.s32.totalorder %s3354_s30, 4  }
 0x61a   :  { %24 = sbr.rel (!%p22_p9) target bundleno = 6 (0x6), region = 104 }
 0x621   :  { %2092 = vsyncpa [#allocation3], 1 }
 0x622   :  { %2094 = vsyncpa [#allocation3 + $0x1], 1 }
 0x623   :  { %2095 = vsyncpa [#allocation6], 1 }
 0x624   :  { %2096 = vsyncpa [#allocation4], 1 }
 0x625   :  { %2098 = vsyncpa [#allocation4 + $0x1], 1 }

</bundles_post_ra>
